<compile_context>
chip_gen: v7x
topology: tpu7x:2x2x1
jax: 0.10.0
libtpu: 0.0.40
codegen_flags: <defaults>
</compile_context>

<pallas_src>
import functools

import jax
import jax.numpy as jnp
from jax import lax
from jax.experimental import pallas as pl
from jax.experimental.pallas import tpu as pltpu


def _round_up(v, m):
    return (v + m - 1) // m * m


def linear_kernel(x_ref, wt_ref, b_ref, o_ref):
    # x_ref : (tm, H) f32 | wt_ref: (H, tn) bf16/f32 (pre-transposed weight)
    # b_ref : (1, tn) f32 | o_ref : (tm, tn) f32
    x = x_ref[...].astype(wt_ref.dtype)                   # cast fused into the kernel
    acc = jnp.dot(x, wt_ref[...], preferred_element_type=jnp.float32)
    o_ref[...] = acc + b_ref[...]                         # bias add in f32


@functools.partial(jax.jit, static_argnames=("tm_max", "tn_max", "cast_to_bf16"))
def bert_head_forward(x, weight, bias, *, tm_max=512, tn_max=256, cast_to_bf16=True):
    """x: (B, T, H) f32; weight: (F, H) f32 (PyTorch nn.Linear layout); bias: (F,) f32."""
    B, T, H = x.shape
    F = weight.shape[0]
    M = B * T

    # ---- row tiling ---------------------------------------------------------
    # >= 2 row tiles when M allows so the parallel M axis shards over v7x's 2 TCs;
    # tm ~ ceil(M / n_tiles) rounded to the f32 sublane (8) keeps ragged waste tiny.
    n_row_tiles = max(pl.cdiv(M, tm_max), 2 if M >= 16 else 1)
    tm = min(_round_up(pl.cdiv(M, n_row_tiles), 8), tm_max)
    grid_m = pl.cdiv(M, tm)

    # ---- column tiling ------------------------------------------------------
    # Tiny F: one full-extent tile (accept masked stores, skip pad + slice).
    # Large F: lane-aligned tiles; ragged tails handled by Pallas OOB masking.
    tn = F if F <= 128 else min(tn_max, _round_up(F, 128))
    grid_f = pl.cdiv(F, tn)

    # ---- one-time (tiny, amortized) weight / bias prep -----------------------
    w_dtype = jnp.bfloat16 if cast_to_bf16 else jnp.float32
    wt = weight.astype(w_dtype).T                    # (H, F): K on the sublane axis
    b2 = bias.astype(jnp.float32).reshape(1, F)
    x2d = x.reshape(M, H)                            # metadata-only reshape

    cost = pl.CostEstimate(
        flops=2 * M * F * H,
        transcendentals=0,
        bytes_accessed=(M * H * 4                              # x, streamed once (f32)
                        + grid_m * H * F * (2 if cast_to_bf16 else 4)  # w, refetched per row tile
                        + F * 4                                 # bias
                        + M * F * 4),                           # output (f32)
    )

    out2d = pl.pallas_call(
        linear_kernel,
        out_shape=jax.ShapeDtypeStruct((M, F), jnp.float32),
        grid_spec=pltpu.PrefetchScalarGridSpec(
            num_scalar_prefetch=0,
            grid=(grid_m, grid_f),
            in_specs=[
                pl.BlockSpec((tm, H), lambda i, j: (i, 0)),    # x row tile (K resident)
                pl.BlockSpec((H, tn), lambda i, j: (0, j)),    # weight^T column tile
                pl.BlockSpec((1, tn), lambda i, j: (0, j)),    # bias tile
            ],
            out_specs=pl.BlockSpec((tm, tn), lambda i, j: (i, j)),
        ),
        compiler_params=pltpu.CompilerParams(
            # Both grid axes are independent -> shard across TensorCores (v7x
            # megacore) and let the runtime double-buffer the tile DMAs.
            dimension_semantics=("parallel", "parallel"),
        ),
        cost_estimate=cost,
    )(x2d, wt, b2)

    # NOTE: with (i outer, j inner) the weight tile is re-DMA'd once per row tile;
    # fine for BertHead-sized F.  For a large-F head (e.g. a vocab projection)
    # swap the grid order so the weight streams once per column tile instead.
    return out2d.reshape(B, T, F)


if __name__ == "__main__":
    # Small shapes consistent with the module: (batch=2, seq=70, hidden=32) -> num_features=16
    B, T, H, F = 2, 70, 32, 16

    key = jax.random.PRNGKey(0)
    kx, kw, kb = jax.random.split(key, 3)

    x = jax.random.normal(kx, (B, T, H), dtype=jnp.float32)
    # PyTorch Linear parameter shapes: weight (F, H), bias (F,)
    weight = jax.random.normal(kw, (F, H), dtype=jnp.float32) * 0.02
    bias = jax.random.normal(kb, (F,), dtype=jnp.float32) * 0.02

    out = bert_head_forward(x, weight, bias)
    jax.block_until_ready(out)
    assert out.shape == (B, T, F)

    # Reference with the same bf16 rounding of the matmul operands, f32 accumulate + f32 bias.
    x_bf = x.astype(jnp.bfloat16).astype(jnp.float32)
    w_bf = weight.astype(jnp.bfloat16).astype(jnp.float32)
    ref = jnp.einsum("bth,fh->btf", x_bf, w_bf, precision=lax.Precision.HIGHEST) + bias
    assert jnp.allclose(out, ref, atol=1e-4, rtol=1e-4), float(jnp.max(jnp.abs(out - ref)))

    # Sanity check vs. the pure-f32 reference within bf16 tolerance.
    ref_f32 = jnp.einsum("bth,fh->btf", x, weight, precision=lax.Precision.HIGHEST) + bias
    assert jnp.allclose(out, ref_f32, atol=5e-2, rtol=5e-2)

    print("KERNEL_OK")
</pallas_src>

<mosaic_0001>
module attributes {stable_mosaic.version = 11 : i64} {
  func.func @linear_kernel(%arg0: i32, %arg1: i32, %arg2: memref<72x32xf32, #tpu.memory_space<vmem>>, %arg3: memref<32x16xbf16, #tpu.memory_space<vmem>>, %arg4: memref<1x16xf32, #tpu.memory_space<vmem>>, %arg5: memref<72x16xf32, #tpu.memory_space<vmem>>) attributes {dimension_semantics = [#tpu.dimension_semantics<parallel>, #tpu.dimension_semantics<parallel>], iteration_bounds = array<i64: 2, 1>, scalar_prefetch = 0 : i64, scratch_operands = 0 : i64, tpu.core_type = #tpu.core_type<tc>, window_params = [{transform_indices = @transform_0, window_bounds = array<i64: 72, 32>}, {transform_indices = @transform_1, window_bounds = array<i64: 32, 16>}, {transform_indices = @transform_2, window_bounds = array<i64: 1, 16>}, {transform_indices = @transform_3, window_bounds = array<i64: 72, 16>}]} {
    %c0 = arith.constant 0 : index
    %c0_0 = arith.constant 0 : index
    %0 = vector.load %arg2[%c0, %c0_0] : memref<72x32xf32, #tpu.memory_space<vmem>>, vector<72x32xf32>
    %1 = arith.truncf %0 : vector<72x32xf32> to vector<72x32xbf16>
    %c0_1 = arith.constant 0 : index
    %c0_2 = arith.constant 0 : index
    %2 = vector.load %arg3[%c0_1, %c0_2] : memref<32x16xbf16, #tpu.memory_space<vmem>>, vector<32x16xbf16>
    %cst = arith.constant dense<0.000000e+00> : vector<72x16xf32>
    %3 = tpu.matmul %1, %2, %cst {dimension_numbers = #tpu.dot_dimension_numbers<[1], [0], [0], [1], [0, 0, 1, 1], [], []>} : vector<72x32xbf16>, vector<32x16xbf16>, vector<72x16xf32> -> vector<72x16xf32>
    %c0_3 = arith.constant 0 : index
    %c0_4 = arith.constant 0 : index
    %4 = vector.load %arg4[%c0_3, %c0_4] : memref<1x16xf32, #tpu.memory_space<vmem>>, vector<1x16xf32>
    %5 = vector.broadcast %4 : vector<1x16xf32> to vector<72x16xf32>
    %6 = arith.addf %3, %5 : vector<72x16xf32>
    %c0_5 = arith.constant 0 : index
    %c0_6 = arith.constant 0 : index
    %7 = vector.load %arg5[%c0_5, %c0_6] : memref<72x16xf32, #tpu.memory_space<vmem>>, vector<72x16xf32>
    tpu.vector_store %arg5[%c0_5, %c0_6], %6 {strides = array<i32>} : memref<72x16xf32, #tpu.memory_space<vmem>>, vector<72x16xf32>,
    return
  }
  func.func @transform_0(%arg0: i32, %arg1: i32) -> (i32, i32) {
    %c0_i32 = arith.constant 0 : i32
    %c0_i32_0 = arith.constant 0 : i32
    return %arg0, %c0_i32 : i32, i32
  }
  func.func @transform_1(%arg0: i32, %arg1: i32) -> (i32, i32) {
    %c0_i32 = arith.constant 0 : i32
    %c0_i32_0 = arith.constant 0 : i32
    return %c0_i32, %arg1 : i32, i32
  }
  func.func @transform_2(%arg0: i32, %arg1: i32) -> (i32, i32) {
    %c0_i32 = arith.constant 0 : i32
    %c0_i32_0 = arith.constant 0 : i32
    return %c0_i32, %arg1 : i32, i32
  }
  func.func @transform_3(%arg0: i32, %arg1: i32) -> (i32, i32) {
    %c0_i32 = arith.constant 0 : i32
    return %arg0, %arg1 : i32, i32
  }
}

</mosaic_0001>

<bundles_post_ra>
// kernel: bert_head_forward.1
= control target key start
LH: loop header
LB: loop body
LE: loop exit
PB: predicated region body
PF: predicated region fallthrough
CT: control target
= control target key end

     0   :  { %s591_s12 = smov 0   ;;  %s593_s13 = smov 0   ;;  %s666_s0 = inlined_call_operand.vmem [shape: f32[140,32], index: 0, kind: input, shape index: {}]   ;;  %s667_s1 = inlined_call_operand.vmem [shape: bf16[32,16], index: 1, kind: input, shape index: {}]   ;;  %s668_s2 = inlined_call_operand.vmem [shape: f32[1,16], index: 2, kind: input, shape index: {}]   ;;  %s669_s3 = inlined_call_operand.vmem [shape: f32[140,16], index: 3, kind: output, shape index: {}]  }
   0x1   :  { %s595_s14 = smov 0  }
   0x2 LB: > { %s25_s15 = sadd.s32 1, %s563_s13  ;;  %p469_p0 = scmp.ge.s32.totalorder %s567_s14, 1  ;;  %s567_s14 = sphi %s595_s14, %s13_s14   ;;  %s563_s13 = sphi %s593_s13, %s671_s13   ;;  %s559_s12 = sphi %s591_s12, %s670_s12  }
   0x3   : > { %p27_p1 = scmp.ge.s32.totalorder %s25_s15, 2  ;;  %p169_p2 = scmp.lt.s32.totalorder %s567_s14, 3 }
   0x5   : > { %s673_s15 = smov (%p27_p1, %s25_s15), 0  ;;  %p170_p3 = pnand %p469_p0, %p169_p2 }
   0x6   : > { %v543_v0 = vld [vmem:[%s667_s1] sm:$0xff] (!%p170_p3)   ;;  %v569_v1 = vmov (!%p170_p3), 0.0   ;;  %v544_v2 = vld [vmem:[%s667_s1 + $0x8] sm:$0xff] (!%p170_p3)   ;;  %vm570_vm0 = vmmov (!%p170_p3), 0   ;;  %s203_s20 = smul.u32 (!%p170_p3), 9, %s559_s12  ;;  %vm263_vm1 = vcmask (!%p170_p3), 261120  }
   0x7   : > { %173 = sbr.rel (%p170_p3) target bundleno = 253 (0xfd), region = 32  ;;  %489 = vmatprep.subr.bf16.mxu0 (!%p170_p3), %v569_v1  ;;  %513 = vmatprep.subr.bf16.mxu1 (!%p170_p3), %v569_v1  ;;  %v472_v17 = vld [vmem:[%s668_s2] ss:$0 sm:$0xff] (!%p170_p3)  ;;  %vm351_vm2 = vcmask (!%p170_p3), 130048  }
   0x8   : > { %490 = vmatpush3.bf16.msra.mxu0 (!%p170_p3), %v543_v0  ;;  %493 = vmatprep.mubr.msk.bf16.mxu0 (!%p170_p3), %vm570_vm0, %v569_v1  ;;  %p204_p4 = scmp.lt.s32.totalorder (!%p170_p3), %s203_s20, 17 }
   0x9   : > { %491 = vmatprep.subr.bf16.mxu0 (!%p170_p3), %v569_v1  ;;  %515 = vmatpush3.bf16.msra.mxu1 (!%p170_p3), %v543_v0 }
   0xa   : > { %514 = vmatprep.subr.bf16.mxu1 (!%p170_p3), %v569_v1  ;;  %505 = vmatprep.mubr.msk.bf16.mxu1 (!%p170_p3), %vm570_vm0, %v569_v1 }
   0xc   : > { %492 = vmatpush3.bf16.msra.mxu0 (!%p170_p3), %v544_v2 }
   0xd   : > { %516 = vmatpush3.bf16.msra.mxu1 (!%p170_p3), %v544_v2 }
   0xe   : > { %s675_s20 = smov (!%p204_p4, %s203_s20), 17 }
   0xf   : > { %s470_s21 = sshll.u32 %s675_s20, 3 }
  0x10   : > { %s207_s24 = scalar_lea.vmem %s666_s0, %s470_s21  ;;  %s637_s29 = scalar_lea.vmem %s669_s3, %s470_s21 }
  0x11   : > { %v226_v3 = vld [vmem:[%s207_s24] sm:$0xff]  ;;  %v227_v4 = vld [vmem:[%s207_s24 + $0x8] sm:$0xff]  ;;  %v232_v5 = vld [vmem:[%s207_s24 + $0x30] sm:$0xff] }
  0x12   : > { %v235_v6 = vpack.c.bf16 %v227_v4, %v226_v3  ;;  %v233_v7 = vld [vmem:[%s207_s24 + $0x38] sm:$0xff]  ;;  %v228_v9 = vld [vmem:[%s207_s24 + $0x10] sm:$0xff]  ;;  %v234_v11 = vld [vmem:[%s207_s24 + $0x40] sm:$0xff] }
  0x13   : > { %v238_v8 = vpack.c.bf16 %v233_v7, %v232_v5  ;;  %v229_v10 = vld [vmem:[%s207_s24 + $0x18] sm:$0xff]  ;;  %v239_v13 = vpack.c.bf16 %v234_v11, %v234_v11  ;;  %v230_v14 = vld [vmem:[%s207_s24 + $0x20] sm:$0xff]  ;;  %v231_v15 = vld [vmem:[%s207_s24 + $0x28] sm:$0xff] }
  0x14   : > { %494 = vmatmul.mubr.msk.bf16.vlgmr.msra.gmra.mrb[0].mxu0 %vm263_vm1, %v235_v6  ;;  %v236_v12 = vpack.c.bf16 %v229_v10, %v228_v9  ;;  %v237_v16 = vpack.c.bf16 %v231_v15, %v230_v14 }
  0x15   : > { %497 = vmatprep.mubr.msk.bf16.mxu0 %vm570_vm0, %v569_v1  ;;  %506 = vmatmul.mubr.msk.bf16.vlgmr.msra.gmra.mrb[0].mxu1 %vm263_vm1, %v238_v8 }
  0x16   : > { %509 = vmatprep.mubr.msk.bf16.mxu1 %vm570_vm0, %v569_v1 }
  0x1c   : > { %498 = vmatmul.mubr.msk.bf16.gmra.mrb[4].mxu0 %vm263_vm1, %v236_v12 }
  0x1d   : > { %501 = vmatprep.mubr.msk.bf16.mxu0 %vm570_vm0, %v569_v1  ;;  %510 = vmatmul.mubr.msk.bf16.gmra.mrb[4].mxu1 %vm263_vm1, %v239_v13 }
  0x24   : > { %502 = vmatmul.mubr.msk.bf16.gmra.mrb[8].mxu0 %vm263_vm1, %v237_v16 }
  0xe7   : > { %v313_v18 = vpop.f32.mrb[0].mxu0 }
  0xe8   : > { %v314_v19 = vadd.f32 %v472_v17, %v313_v18  ;;  %v495_v20 = vpop.f32.mrb[1].mxu0  ;;  %v337_v21 = vpop.f32.mrb[0].mxu1 }
  0xe9   : > { %v316_v22 = vpop.f32.mrb[2].mxu0  ;;  %v338_v23 = vadd.f32 %v472_v17, %v337_v21  ;;  %v507_v24 = vpop.f32.mrb[1].mxu1 }
  0xea   : > { %352 = vst.msk [vmem:[%s637_s29] sm:$0xff] %vm351_vm2, %v314_v19  ;;  %v317_v25 = vadd.f32 %v472_v17, %v316_v22  ;;  %v496_v26 = vpop.f32.mrb[3].mxu0  ;;  %v340_v27 = vpop.f32.mrb[2].mxu1 }
  0xeb   : > { %358 = vst.msk [vmem:[%s637_s29 + $0x30] sm:$0xff] %vm351_vm2, %v338_v23  ;;  %v341_v28 = vadd.f32 %v472_v17, %v340_v27  ;;  %v508_v29 = vpop.f32.mrb[3].mxu1 }
  0xec   : > { %353 = vst.msk [vmem:[%s637_s29 + $0x8] sm:$0xff] %vm351_vm2, %v317_v25 }
  0xed   : > { %359 = vst.msk [vmem:[%s637_s29 + $0x38] sm:$0xff] %vm351_vm2, %v341_v28 }
  0xef   : > { %v321_v30 = vpop.f32.mrb[4].mxu0 }
  0xf0   : > { %v322_v31 = vadd.f32 %v472_v17, %v321_v30  ;;  %v499_v32 = vpop.f32.mrb[5].mxu0  ;;  %v345_v33 = vpop.f32.mrb[4].mxu1 }
  0xf1   : > { %v324_v34 = vpop.f32.mrb[6].mxu0  ;;  %v346_v35 = vadd.f32 %v472_v17, %v345_v33  ;;  %v511_v36 = vpop.f32.mrb[5].mxu1 }
  0xf2   : > { %354 = vst.msk [vmem:[%s637_s29 + $0x10] sm:$0xff] %vm351_vm2, %v322_v31  ;;  %v325_v37 = vadd.f32 %v472_v17, %v324_v34  ;;  %v500_v38 = vpop.f32.mrb[7].mxu0  ;;  %v348_v39 = vpop.f32.mrb[6].mxu1 }
  0xf3   : > { %360 = vst.msk [vmem:[%s637_s29 + $0x40] sm:$0xff] %vm351_vm2, %v346_v35  ;;  %v512_v40 = vpop.f32.mrb[7].mxu1 }
  0xf4   : > { %355 = vst.msk [vmem:[%s637_s29 + $0x18] sm:$0xff] %vm351_vm2, %v325_v37 }
  0xf7   : > { %v329_v41 = vpop.f32.mrb[8].mxu0 }
  0xf8   : > { %v330_v42 = vadd.f32 %v472_v17, %v329_v41  ;;  %v503_v43 = vpop.f32.mrb[9].mxu0 }
  0xf9   : > { %v332_v44 = vpop.f32.mrb[10].mxu0 }
  0xfa   : > { %356 = vst.msk [vmem:[%s637_s29 + $0x20] sm:$0xff] %vm351_vm2, %v330_v42  ;;  %v333_v45 = vadd.f32 %v472_v17, %v332_v44  ;;  %v504_v46 = vpop.f32.mrb[11].mxu0 }
  0xfc   : > { %357 = vst.msk [vmem:[%s637_s29 + $0x28] sm:$0xff] %vm351_vm2, %v333_v45 }
  0xfd PF: > { %s13_s14 = sadd.s32 1, %s567_s14   ;;  %s670_s12 = smov %s563_s13 }
  0xfe   : > { %p10_p5 = scmp.ge.s32.totalorder %s13_s14, 4   ;;  %s671_s13 = smov %s673_s15 }
 0x100   :  { %12 = sbr.rel (!%p10_p5) target bundleno = 2 (0x2), region = 68 }

</bundles_post_ra>
